<compile_context>
chip_gen: v6e
topology: v6e:2x2x1
jax: 0.10.0
libtpu: 0.0.40
codegen_flags: <defaults>
</compile_context>

<pallas_src>
import functools
import math

import jax
import jax.numpy as jnp
import numpy as np
from jax.experimental import pallas as pl
from jax.experimental.pallas import tpu as pltpu


def _rbf_kernel(x_ref, shift_rep_ref, w_ref, o_ref, *, num_terms,
                neg_inv_two_l2, replicate_in_kernel):
    """x_ref: (TB, S) or pre-tiled (TB, T*S); shift_rep_ref/w_ref: (1, T*S);
    o_ref: (TB, T*S).  Single fused elementwise chain, single lane-dense store."""
    if replicate_in_kernel:
        x = x_ref[...]                                        # (TB, S)
        x_rep = jnp.concatenate([x] * num_terms, axis=-1)     # (TB, T*S), lane-aligned
    else:
        x_rep = x_ref[...]                                    # already (TB, T*S)
    d = x_rep - shift_rep_ref[...]                            # broadcast (1,T*S) over TB
    o_ref[...] = jnp.exp((d * d) * neg_inv_two_l2) * w_ref[...]


def _pick_batch_tile(B, row_bytes, budget_bytes=24 << 20):
    """Largest batch tile (multiple of 8, divides B) whose double-buffered
    footprint fits comfortably under the default scoped-VMEM limit (works for
    v7x's 64 MiB VMEM as well as v5e/v6e's 128 MiB)."""
    for tb in (2048, 1024, 512, 256, 128, 64, 32, 16, 8):
        if tb <= B and B % tb == 0 and 2 * tb * row_bytes <= budget_bytes:
            return tb
    return B  # tiny or non-multiple-of-8 batch: single full-height block


def radial_basis_function_pallas(x, weight, shift, *, num_terms, sep=0.5):
    """x: (B, size_in) f32; weight: (1, num_terms*size_in) f32; shift: (num_terms,) f32."""
    B, size_in = x.shape
    if num_terms < 2:
        raise ValueError("num_terms must be >= 2 (N = num_terms - 1 appears in a divisor)")
    N = num_terms - 1
    l = 1.0 / (2.0 * N * math.sqrt(-2.0 * math.log(sep)))
    neg_inv_two_l2 = -1.0 / (2.0 * l * l)

    width = num_terms * size_in
    # Pre-expanded shift so the kernel is a single full-width fused expression.
    shift_rep = jnp.repeat(shift.astype(x.dtype), size_in)[None, :]     # (1, width)

    # Lane replication strategy for x (see header comment).
    replicate_in_kernel = (size_in % 128 == 0)
    if replicate_in_kernel:
        x_in, x_cols = x, size_in
    else:
        x_in, x_cols = jnp.tile(x, (1, num_terms)), width

    row_bytes = (x_cols + width) * 4
    TB = _pick_batch_tile(B, row_bytes)
    grid = (pl.cdiv(B, TB),)

    kernel = functools.partial(
        _rbf_kernel,
        num_terms=num_terms,
        neg_inv_two_l2=neg_inv_two_l2,
        replicate_in_kernel=replicate_in_kernel,
    )
    return pl.pallas_call(
        kernel,
        out_shape=jax.ShapeDtypeStruct((B, width), x.dtype),
        grid_spec=pltpu.PrefetchScalarGridSpec(
            num_scalar_prefetch=0,
            grid=grid,
            in_specs=[
                pl.BlockSpec((TB, x_cols), lambda i: (i, 0)),   # x tile (pipelined)
                pl.BlockSpec((1, width), lambda i: (0, 0)),     # shift_rep (resident)
                pl.BlockSpec((1, width), lambda i: (0, 0)),     # weight (resident)
            ],
            out_specs=pl.BlockSpec((TB, width), lambda i: (i, 0)),
        ),
        compiler_params=pltpu.CompilerParams(
            dimension_semantics=("parallel",),   # shard batch grid across TCs (v7x)
        ),
    )(x_in, shift_rep, weight)


def _reference(x, weight, shift, *, num_terms, sep=0.5):
    """Plain-JAX reference mirroring the PyTorch forward."""
    N = num_terms - 1
    l = 1.0 / (2.0 * N * math.sqrt(-2.0 * math.log(sep)))
    parts = [(x - shift[i]) ** 2 for i in range(num_terms)]
    a = jnp.concatenate(parts, axis=1)
    return jnp.exp(-a / (2.0 * l * l)) * weight


def _make_params(key, size_in, num_terms):
    """Deterministic params matching the module's __init__:
    weight kaiming_uniform_(a=sqrt(5)) -> U(-1/sqrt(fan_in), 1/sqrt(fan_in));
    shift[i] = i / N (non-trainable)."""
    fan_in = num_terms * size_in
    bound = 1.0 / math.sqrt(fan_in)
    weight = jax.random.uniform(
        key, (1, num_terms * size_in), dtype=jnp.float32, minval=-bound, maxval=bound
    )
    N = num_terms - 1
    shift = (jnp.arange(num_terms, dtype=jnp.float32) / N).astype(jnp.float32)
    return weight, shift


if __name__ == "__main__":
    sep = 0.5
    key = jax.random.PRNGKey(0)
    k1, k2, k3, k4 = jax.random.split(key, 4)

    # Case 1: lane-aligned feature width -> in-kernel lane replication path,
    # batch-tiled grid of 3 steps (B=384, TB=128).
    B, size_in, num_terms = 384, 128, 4
    x = jax.random.normal(k1, (B, size_in), dtype=jnp.float32)
    weight, shift = _make_params(k2, size_in, num_terms)
    out = radial_basis_function_pallas(x, weight, shift, num_terms=num_terms, sep=sep)
    out = jax.block_until_ready(out)
    ref = _reference(x, weight, shift, num_terms=num_terms, sep=sep)
    assert out.shape == (B, num_terms * size_in)
    assert np.allclose(np.asarray(out), np.asarray(ref), rtol=1e-5, atol=1e-5)

    # Case 2: the module's original tiny shape (non-128-aligned size_in) ->
    # wrapper-side tiling fallback, single-block grid.
    B2, size_in2, num_terms2 = 8, 16, 5
    x2 = jax.random.normal(k3, (B2, size_in2), dtype=jnp.float32)
    weight2, shift2 = _make_params(k4, size_in2, num_terms2)
    out2 = radial_basis_function_pallas(x2, weight2, shift2, num_terms=num_terms2, sep=sep)
    out2 = jax.block_until_ready(out2)
    ref2 = _reference(x2, weight2, shift2, num_terms=num_terms2, sep=sep)
    assert out2.shape == (B2, num_terms2 * size_in2)
    assert np.allclose(np.asarray(out2), np.asarray(ref2), rtol=1e-5, atol=1e-5)

    print("KERNEL_OK")
</pallas_src>

<mosaic_0001>
module attributes {stable_mosaic.version = 11 : i64} {
  func.func @_rbf_kernel(%arg0: i32, %arg1: memref<128x128xf32, #tpu.memory_space<vmem>>, %arg2: memref<1x512xf32, #tpu.memory_space<vmem>>, %arg3: memref<1x512xf32, #tpu.memory_space<vmem>>, %arg4: memref<128x512xf32, #tpu.memory_space<vmem>>) attributes {dimension_semantics = [#tpu.dimension_semantics<parallel>], iteration_bounds = array<i64: 3>, scalar_prefetch = 0 : i64, scratch_operands = 0 : i64, tpu.core_type = #tpu.core_type<tc>, window_params = [{transform_indices = @transform_0, window_bounds = array<i64: 128, 128>}, {pipeline_mode = #tpu.pipeline_mode<synchronous>, transform_indices = @transform_1, window_bounds = array<i64: 1, 512>}, {pipeline_mode = #tpu.pipeline_mode<synchronous>, transform_indices = @transform_2, window_bounds = array<i64: 1, 512>}, {transform_indices = @transform_3, window_bounds = array<i64: 128, 512>}]} {
    %c0 = arith.constant 0 : index
    %c0_0 = arith.constant 0 : index
    %0 = vector.load %arg1[%c0, %c0_0] : memref<128x128xf32, #tpu.memory_space<vmem>>, vector<128x128xf32>
    %1 = tpu.concatenate %0, %0, %0, %0 in 1 : vector<128x128xf32>, vector<128x128xf32>, vector<128x128xf32>, vector<128x128xf32> -> vector<128x512xf32>
    %c0_1 = arith.constant 0 : index
    %c0_2 = arith.constant 0 : index
    %2 = vector.load %arg2[%c0_1, %c0_2] : memref<1x512xf32, #tpu.memory_space<vmem>>, vector<1x512xf32>
    %3 = vector.broadcast %2 : vector<1x512xf32> to vector<128x512xf32>
    %4 = arith.subf %1, %3 : vector<128x512xf32>
    %5 = arith.mulf %4, %4 : vector<128x512xf32>
    %cst = arith.constant -24.9532986 : f32
    %6 = vector.broadcast %cst : f32 to vector<128x512xf32>
    %7 = arith.mulf %5, %6 : vector<128x512xf32>
    %8 = math.exp %7 : vector<128x512xf32>
    %c0_3 = arith.constant 0 : index
    %c0_4 = arith.constant 0 : index
    %9 = vector.load %arg3[%c0_3, %c0_4] : memref<1x512xf32, #tpu.memory_space<vmem>>, vector<1x512xf32>
    %10 = vector.broadcast %9 : vector<1x512xf32> to vector<128x512xf32>
    %11 = arith.mulf %8, %10 : vector<128x512xf32>
    %c0_5 = arith.constant 0 : index
    %c0_6 = arith.constant 0 : index
    %12 = vector.load %arg4[%c0_5, %c0_6] : memref<128x512xf32, #tpu.memory_space<vmem>>, vector<128x512xf32>
    tpu.vector_store %arg4[%c0_5, %c0_6], %11 {strides = array<i32>} : memref<128x512xf32, #tpu.memory_space<vmem>>, vector<128x512xf32>,
    return
  }
  func.func @transform_0(%arg0: i32) -> (i32, i32) {
    %c0_i32 = arith.constant 0 : i32
    %c0_i32_0 = arith.constant 0 : i32
    return %arg0, %c0_i32 : i32, i32
  }
  func.func @transform_1(%arg0: i32) -> (i32, i32) {
    %c0_i32 = arith.constant 0 : i32
    %c0_i32_0 = arith.constant 0 : i32
    %c0_i32_1 = arith.constant 0 : i32
    return %c0_i32, %c0_i32_0 : i32, i32
  }
  func.func @transform_2(%arg0: i32) -> (i32, i32) {
    %c0_i32 = arith.constant 0 : i32
    %c0_i32_0 = arith.constant 0 : i32
    %c0_i32_1 = arith.constant 0 : i32
    return %c0_i32, %c0_i32_0 : i32, i32
  }
  func.func @transform_3(%arg0: i32) -> (i32, i32) {
    %c0_i32 = arith.constant 0 : i32
    %c0_i32_0 = arith.constant 0 : i32
    return %arg0, %c0_i32 : i32, i32
  }
}

</mosaic_0001>

<bundles_post_ra>
// kernel: tpu_custom_call.1
= control target key start
LH: loop header
LB: loop body
LE: loop exit
PB: predicated region body
PF: predicated region fallthrough
CT: control target
= control target key end

     0   :  { %8 = vsyncpa [#allocation3], 0  ;;  %s1652_s0 = inlined_call_operand.hbm [shape: f32[384,128], index: 0, kind: input, shape index: {}]   ;;  %s1653_s1 = inlined_call_operand.hbm [shape: f32[1,512], index: 1, kind: input, shape index: {}]   ;;  %s1654_s2 = inlined_call_operand.hbm [shape: f32[1,512], index: 2, kind: input, shape index: {}]   ;;  %s1655_s3 = inlined_call_operand.hbm [shape: f32[384,512], index: 3, kind: output, shape index: {}]  }
   0x1   :  { %10 = vsyncpa [#allocation3 + $0x1], 0 }
   0x2   :  { %11 = vsyncpa [#allocation6], 0 }
   0x3   :  { %12 = vsyncpa [#allocation4], 0 }
   0x4   :  { %14 = vsyncpa [#allocation4 + $0x1], 0  ;;  %s1230_s12 = smov 0   ;;  %s1232_s13 = smov 0  }
   0x5   :  { %s1234_s14 = smov 0   ;;  %s1236_s15 = smov 0  }
   0x6 LB: > { %s1251_s16 = sadd.s32 4294967295, %s1200_s15   ;;  %s831_s17 = sadd.s32 4294967294, %s1200_s15   ;;  %s1200_s15 = sphi %s1236_s15, %s1676_s15   ;;  %s1196_s14 = sphi %s1234_s14, %s1675_s14   ;;  %s1192_s13 = sphi %s1232_s13, %s1674_s13   ;;  %s1188_s12 = sphi %s1230_s12, %s1673_s12  }
   0x7   : > { %s1255_s18 = sadd.s32 1, %s1200_s15   ;;  %s27_s19 = sadd.s32 1, %s1196_s14 }
   0x8   : > { %s24_s20 = ssub.s32 %s1200_s15, %s1255_s18  ;;  %p34_p0 = scmp.ne.s32.totalorder %s1196_s14, %s1192_s13 }
   0x9   : > { %p25_p1 = scmp.eq.s32.totalorder %s24_s20, 0  ;;  %p35_p2 = scmp.eq.s32.totalorder %s1200_s15, 0 }
   0xa   : > { %p40_p3 = scmp.ne.s32.totalorder %s1192_s13, %s1188_s12  ;;  %p1656_p4 = scmp.eq.s32.totalorder %s1251_s16, 0 }
   0xb   : > { %s1267_s21 = scalar_select %p25_p1, %s1196_s14, %s27_s19  }
   0xc   : > { %p1269_p5 = por %p35_p2, %p34_p0  ;;  %p1275_p6 = por %p1656_p4, %p40_p3 }
   0xd   : > { %p106_p7 = scmp.eq.s32.totalorder %s1251_s16, 2  ;;  %p112_p8 = scmp.eq.s32.totalorder %s831_s17, 2 }
   0xe   : > { %s1661_s23 = scalar_select %p1275_p6, 1, 0 }
   0xf   : > { %p832_p9 = scmp.ge.s32.totalorder %s1200_s15, 1  ;;  %p119_p10 = scmp.lt.s32.totalorder %s1200_s15, 4 }
  0x10   : > { %p1282_p11 = por %p106_p7, %p34_p0  ;;  %p1286_p12 = por %p112_p8, %p40_p3 }
  0x11   : > { %p1290_p13 = pnand %p832_p9, %p119_p10  ;;  %s1202_s27 = smov [#allocation5]  }
  0x12   : > { %s1662_s24 = scalar_select %p1282_p11, 1, 0 }
  0x13   : > { %s1663_s25 = scalar_select %p1286_p12, 1, 0 }
  0x14   : > { %s1664_s26 = scalar_select %p1290_p13, 1, 0 }
  0x15   : > { %p865_p1 = pneg %p1290_p13  ;;  %s132_s28 = sshll.u32 %s1202_s27, 4  ;;  %s133_s28 = int_to_ptr.vmem [resolvable:$true] %s132_s28 }
  0x16   : > { %p882_p2 = scmp.lt.s32.totalorder %s1200_s15, 3  ;;  %s1203_s4 = smov [#allocation7]  }
  0x17   : > { %p1299_p0 = pnand %p865_p1, %p1656_p4  ;;  %s143_s5 = sshll.u32 %s1203_s4, 4  ;;  %s144_s5 = int_to_ptr.vmem [resolvable:$true] %s143_s5 }
  0x18   : > { %p1305_p3 = pnand %p882_p2, %p1269_p5  ;;  %s1063_s6 = scalar_lea.vmem %s133_s28, 64 }
  0x19   : > { %p1054_p7 = pneg %p1299_p0  ;;  %p1064_p8 = scmp.ne.s32.totalorder %s133_s28, %s1063_s6 }
  0x1a   : > { %p1071_p1 = scmp.lt.s32.totalorder %s133_s28, %s133_s28  ;;  %p1072_p4 = scmp.lt.s32.totalorder %s1063_s6, %s1063_s6 }
  0x1b   : > { %p1066_p9 = pnand %p1064_p8, %p1054_p7 }
  0x1c   : > { %p1073_p12 = por %p1072_p4, %p1071_p1 }
  0x1d   : > { %p1067_p10 = pneg %p1066_p9 }
  0x1f   : > { %p1074_p11 = pnand %p1073_p12, %p1067_p10 }
  0x21   : > { %1077 = shalt.err (!%p1074_p11)
}
  0x22   : > { %868 = dma.hbm_to_vmem [thread:$0]  (!%p1299_p0), %s1653_s1, 64, %s133_s28, [#allocation6]  }
  0x23   : > { %s154_s9 = sand.u32 1, %s1196_s14   ;;  %s1089_s10 = scalar_lea.vmem %s144_s5, 64 }
  0x24   : > { %p1090_p5 = scmp.ne.s32.totalorder %s144_s5, %s1089_s10  ;;  %p1097_p9 = scmp.lt.s32.totalorder %s144_s5, %s144_s5 }
  0x25   : > { %p1098_p6 = scmp.lt.s32.totalorder %s1089_s10, %s1089_s10 }
  0x26   : > { %p1092_p2 = pnand %p1090_p5, %p1054_p7 }
  0x27   : > { %p1099_p4 = por %p1098_p6, %p1097_p9 }
  0x28   : > { %p1093_p8 = pneg %p1092_p2 }
  0x2a   : > { %p1100_p12 = pnand %p1099_p4, %p1093_p8 }
  0x2c   : > { %1103 = shalt.err (!%p1100_p12)
}
  0x2d   : > { %871 = dma.hbm_to_vmem [thread:$0]  (!%p1299_p0), %s1654_s2, 64, %s144_s5, [#allocation6]  }
  0x2e   : > { %s836_s19 = sshll.u32 %s154_s9, 7  ;;  %s850_s20 = sshll.u32 %s1200_s15, 11 }
  0x2f   : > { %s1332_s28 = scalar_lea.hbm %s1652_s0, %s850_s20  ;;  %s158_s4 = scalar_lea.vmem [#allocation2], %s836_s19 }
  0x30   : > { %s165_s6 = sshll.u32 %s158_s4, 4  ;;  %s1336_s29 = scalar_lea.sflag [#allocation3], %s154_s9  ;;  %s1334_s6 = int_to_ptr.vmem [resolvable:$true] %s165_s6 }
  0x31   : > { %s1104_s7 = scalar_lea.hbm %s1332_s28, 2048  ;;  %p1106_p11 = pneg %p1305_p3 }
  0x32   : > { %p1105_p6 = scmp.ne.s32.totalorder %s1332_s28, %s1104_s7  ;;  %s1109_s10 = scalar_lea.hbm %s1652_s0, 6144 }
  0x33   : > { %p1110_p10 = scmp.lt.s32.totalorder %s1332_s28, %s1652_s0  ;;  %p1111_p1 = scmp.lt.s32.totalorder %s1109_s10, %s1104_s7 }
  0x34   : > { %p1107_p0 = pnand %p1106_p11, %p1105_p6 }
  0x35   : > { %p1112_p5 = por %p1111_p1, %p1110_p10 }
  0x36   : > { %p1108_p7 = pneg %p1107_p0 }
  0x38   : > { %p1113_p2 = pnand %p1112_p5, %p1108_p7 }
  0x3a   : > { %1116 = shalt.err (!%p1113_p2)
}
  0x3b   : > { %s1117_s9 = scalar_lea.vmem %s1334_s6, 2048  ;;  %s1204_s19 = smov [#allocation2]  }
  0x3c   : > { %p1118_p8 = scmp.ne.s32.totalorder %s1334_s6, %s1117_s9  ;;  %s1122_s20 = sshll.u32 %s1204_s19, 4  ;;  %s1123_s20 = int_to_ptr.vmem [resolvable:$false] %s1122_s20 }
  0x3d   : > { %s1124_s22 = scalar_lea.vmem %s1123_s20, 4096  ;;  %p1125_p12 = scmp.lt.s32.totalorder %s1334_s6, %s1123_s20 }
  0x3e   : > { %p1120_p9 = pnand %p1118_p8, %p1106_p11  ;;  %p1126_p6 = scmp.lt.s32.totalorder %s1124_s22, %s1117_s9 }
  0x40   : > { %p1121_p4 = pneg %p1120_p9  ;;  %p1127_p0 = por %p1126_p6, %p1125_p12 }
  0x42   : > { %p1128_p13 = pnand %p1127_p0, %p1121_p4 }
  0x44   : > { %1131 = shalt.err (!%p1128_p13)
}
  0x45   : > { %s1205_s27 = smov 128   ;;  %s1206_s4 = smov 8  }
  0x46   : > { %875 = dma.hbm_to_vmem [thread:$0]  (!%p1305_p3), %s1332_s28, 2048, %s1334_s6, %s1336_s29, %s1205_s27, %s1205_s27, %s1206_s4  }
  0x47   : > { %p1667_p11 = scmp.ne.s32.totalorder %s1664_s26, 0 }
  0x48   : > { %s1360_s7 = sand.u32 (!%p1667_p11), 1, %s1192_s13   ;;  %p1668_p13 = scmp.ne.s32.totalorder (!%p1667_p11), %s1661_s23, 0 }
  0x49   : > { %177 = sbr.rel (%p1667_p11) target bundleno = 216 (0xd8), region = 32  ;;  %s840_s5 = sshll.u32 (!%p1667_p11), %s1360_s7, 7 }
  0x4a   : > { %s180_s8 = scalar_lea.sflag (!%p1667_p11), [#allocation3], %s1360_s7  ;;  %s1364_s10 = scalar_lea.vmem (!%p1667_p11), [#allocation2], %s840_s5 }
  0x4e   : > { %1175 = dma.done.wait (%p1668_p13), %s180_s8, 2048  }
  0x4f   : > { %1177 = vsyncadd (%p1668_p13), %s180_s8, 4294965248  ;;  %p1669_p3 = scmp.eq.s32.totalorder %s1251_s16, 0 }
  0x51   : > { %1179 = dma.done.wait (%p1669_p3), [#allocation6], 128   ;;  %p1670_p7 = pmov %p1669_p3 }
  0x52   : > { %v234_v0 = vlaneseq  ;;  %v216_v6 = vld [vmem:[%s1364_s10] sm:$0xff]  ;;  %v217_v13 = vld [vmem:[%s1364_s10 + $0x8] sm:$0xff]  ;;  %v218_v26 = vld [vmem:[%s1364_s10 + $0x10] sm:$0xff]  ;;  %s843_s23 = sshll.u32 %s1360_s7, 9  ;;  %s852_s30 = sshll.u32 %s1251_s16, 13 }
  0x53   : > { %1181 = vsyncadd (%p1670_p7), [#allocation6], 4294967168  ;;  %v232_v7 = vld [vmem:[#allocation5] sm:$0xf]  ;;  %v574_v8 = vld [vmem:[#allocation7] sm:$0xf]  ;;  %s1604_s11 = scalar_lea.hbm %s1655_s3, %s852_s30 }
  0x54   : > { %v235_v1 = vshrl.u32 %v234_v0, 7  ;;  %v219_v57 = vld [vmem:[%s1364_s10 + $0x18] sm:$0xff]  ;;  %s1423_s26 = scalar_lea.vmem [#allocation8], %s843_s23  ;;  %s725_s16 = scalar_lea.sflag [#allocation4], %s1360_s7 }
  0x55   : > { %s739_s28 = sshll.u32 %s1423_s26, 4  ;;  %p1671_p1 = scmp.ne.s32.totalorder %s1662_s24, 0  ;;  %s1606_s28 = int_to_ptr.vmem [resolvable:$true] %s739_s28 }
  0x56   : > { %v236_v2 = vsub.s32 0, %v235_v1  ;;  %v240_v3 = vsub.s32 1, %v235_v1  ;;  %v244_v4 = vsub.s32 2, %v235_v1  ;;  %v248_v5 = vsub.s32 3, %v235_v1  ;;  %s1132_s17 = scalar_lea.vmem %s1606_s28, 8192  ;;  %s1207_s9 = smov [#allocation8]  }
  0x57   : > { %p1133_p10 = scmp.ne.s32.totalorder %s1606_s28, %s1132_s17  ;;  %s1136_s19 = sshll.u32 %s1207_s9, 4  ;;  %s1137_s19 = int_to_ptr.vmem [resolvable:$false] %s1136_s19 }
  0x58   : > { %v1375_v9 = vrot.slane %v232_v7, %v236_v2  ;;  %v1377_v10 = vrot.slane %v574_v8, %v236_v2  ;;  %v1379_v11 = vrot.slane %v232_v7, %v240_v3  ;;  %v1381_v12 = vrot.slane %v574_v8, %v240_v3  ;;  %s1138_s20 = scalar_lea.vmem %s1137_s19, 16384  ;;  %p1139_p8 = scmp.lt.s32.totalorder %s1606_s28, %s1137_s19 }
  0x59   : > { %v1384_v14 = vrot.slane %v232_v7, %v244_v4  ;;  %v1386_v15 = vrot.slane %v574_v8, %v244_v4  ;;  %v1388_v16 = vrot.slane %v232_v7, %v248_v5  ;;  %v1390_v17 = vrot.slane %v574_v8, %v248_v5  ;;  %p1134_p5 = pnand %p1133_p10, %p1671_p1  ;;  %p1140_p9 = scmp.lt.s32.totalorder %s1138_s20, %s1132_s17 }
  0x5a   : > { %v254_v18 = vsub.f32 %v216_v6, %v1375_v9  ;;  %v255_v19 = vsub.f32 %v216_v6, %v1379_v11  ;;  %v258_v20 = vsub.f32 %v217_v13, %v1375_v9  ;;  %v259_v21 = vsub.f32 %v217_v13, %v1379_v11 }
  0x5b   : > { %v256_v22 = vsub.f32 %v216_v6, %v1384_v14  ;;  %v257_v23 = vsub.f32 %v216_v6, %v1388_v16  ;;  %v260_v24 = vsub.f32 %v217_v13, %v1384_v14  ;;  %v261_v25 = vsub.f32 %v217_v13, %v1388_v16  ;;  %v220_v13 = vld [vmem:[%s1364_s10 + $0x20] sm:$0xff]  ;;  %p1135_p2 = pneg %p1134_p5  ;;  %p1141_p4 = por %p1140_p9, %p1139_p8 }
  0x5c   : > { %v318_v27 = vmul.f32 %v254_v18, %v254_v18  ;;  %v319_v28 = vmul.f32 %v255_v19, %v255_v19  ;;  %v322_v29 = vmul.f32 %v258_v20, %v258_v20  ;;  %v323_v30 = vmul.f32 %v259_v21, %v259_v21 }
  0x5d   : > { %v320_v31 = vmul.f32 %v256_v22, %v256_v22  ;;  %v321_v32 = vmul.f32 %v257_v23, %v257_v23  ;;  %v324_v33 = vmul.f32 %v260_v24, %v260_v24  ;;  %v325_v34 = vmul.f32 %v261_v25, %v261_v25  ;;  %p1142_p12 = pnand %p1141_p4, %p1135_p2 }
  0x5e   : > { %v382_v35 = vmul.f32 -24.953299, %v318_v27  ;;  %v383_v36 = vmul.f32 -24.953299, %v319_v28  ;;  %v386_v37 = vmul.f32 -24.953299, %v322_v29  ;;  %v262_v38 = vsub.f32 %v218_v26, %v1375_v9 }
  0x5f   : > { %v384_v39 = vmul.f32 -24.953299, %v320_v31  ;;  %v385_v40 = vmul.f32 -24.953299, %v321_v32  ;;  %v387_v41 = vmul.f32 -24.953299, %v323_v30  ;;  %v263_v42 = vsub.f32 %v218_v26, %v1379_v11 }
  0x60   : > { %v446_v43 = vmul.f32 1.442695, %v382_v35  ;;  %v448_v44 = vmul.f32 1.442695, %v383_v36  ;;  %v454_v45 = vmul.f32 1.442695, %v386_v37  ;;  %v326_v46 = vmul.f32 %v262_v38, %v262_v38 }
  0x61   : > { %v450_v47 = vmul.f32 1.442695, %v384_v39  ;;  %v452_v48 = vmul.f32 1.442695, %v385_v40  ;;  %v456_v49 = vmul.f32 1.442695, %v387_v41  ;;  %v327_v50 = vmul.f32 %v263_v42, %v263_v42 }
  0x62   : > { %924 = vpow2.f32 %v446_v43  ;;  %v388_v51 = vmul.f32 -24.953299, %v324_v33  ;;  %v389_v52 = vmul.f32 -24.953299, %v325_v34  ;;  %v390_v53 = vmul.f32 -24.953299, %v326_v46 }
  0x63   : > { %926 = vpow2.f32 %v448_v44  ;;  %v391_v54 = vmul.f32 -24.953299, %v327_v50  ;;  %v264_v55 = vsub.f32 %v218_v26, %v1384_v14  ;;  %v265_v56 = vsub.f32 %v218_v26, %v1388_v16  ;;  %v221_v27 = vld [vmem:[%s1364_s10 + $0x28] sm:$0xff] }
  0x64   : > { %928 = vpow2.f32 %v450_v47  ;;  %v458_v58 = vmul.f32 1.442695, %v388_v51  ;;  %v460_v59 = vmul.f32 1.442695, %v389_v52  ;;  %v462_v60 = vmul.f32 1.442695, %v390_v53 }
  0x65   : > { %930 = vpow2.f32 %v452_v48  ;;  %v464_v61 = vmul.f32 1.442695, %v391_v54  ;;  %v328_v62 = vmul.f32 %v264_v55, %v264_v55  ;;  %v329_v63 = vmul.f32 %v265_v56, %v265_v56 }
  0x66   : > { %932 = vpow2.f32 %v454_v45  ;;  %v266_v0 = vsub.f32 %v219_v57, %v1375_v9  ;;  %v267_v1 = vsub.f32 %v219_v57, %v1379_v11  ;;  %v268_v2 = vsub.f32 %v219_v57, %v1384_v14 }
  0x67   : > { %934 = vpow2.f32 %v456_v49  ;;  %v392_v3 = vmul.f32 -24.953299, %v328_v62  ;;  %v393_v4 = vmul.f32 -24.953299, %v329_v63  ;;  %v269_v5 = vsub.f32 %v219_v57, %v1388_v16 }
  0x68   : > { %936 = vpow2.f32 %v458_v58  ;;  %v330_v6 = vmul.f32 %v266_v0, %v266_v0  ;;  %v331_v7 = vmul.f32 %v267_v1, %v267_v1  ;;  %v332_v8 = vmul.f32 %v268_v2, %v268_v2  ;;  %v222_v58 = vld [vmem:[%s1364_s10 + $0x30] sm:$0xff] }
  0x69   : > { %938 = vpow2.f32 %v460_v59  ;;  %v466_v18 = vmul.f32 1.442695, %v392_v3  ;;  %v468_v19 = vmul.f32 1.442695, %v393_v4  ;;  %v333_v20 = vmul.f32 %v269_v5, %v269_v5 }
  0x6a   : > { %940 = vpow2.f32 %v462_v60  ;;  %v394_v21 = vmul.f32 -24.953299, %v330_v6  ;;  %v395_v22 = vmul.f32 -24.953299, %v331_v7  ;;  %v396_v23 = vmul.f32 -24.953299, %v332_v8 }
  0x6b   : > { %942 = vpow2.f32 %v464_v61  ;;  %v397_v24 = vmul.f32 -24.953299, %v333_v20  ;;  %v270_v25 = vsub.f32 %v220_v13, %v1375_v9  ;;  %v271_v26 = vsub.f32 %v220_v13, %v1379_v11 }
  0x6c   : > { %944 = vpow2.f32 %v466_v18  ;;  %v470_v28 = vmul.f32 1.442695, %v394_v21  ;;  %v472_v29 = vmul.f32 1.442695, %v395_v22  ;;  %v474_v30 = vmul.f32 1.442695, %v396_v23 }
  0x6d   : > { %946 = vpow2.f32 %v468_v19  ;;  %v476_v31 = vmul.f32 1.442695, %v397_v24  ;;  %v334_v32 = vmul.f32 %v270_v25, %v270_v25  ;;  %v335_v33 = vmul.f32 %v271_v26, %v271_v26 }
  0x6e   : > { %948 = vpow2.f32 %v470_v28  ;;  %v272_v34 = vsub.f32 %v220_v13, %v1384_v14  ;;  %v273_v35 = vsub.f32 %v220_v13, %v1388_v16  ;;  %v274_v36 = vsub.f32 %v221_v27, %v1375_v9 }
  0x6f   : > { %v925_v37 = vpop.eup %924  ;;  %950 = vpow2.f32 %v472_v29  ;;  %v398_v38 = vmul.f32 -24.953299, %v334_v32  ;;  %v399_v39 = vmul.f32 -24.953299, %v335_v33  ;;  %v275_v40 = vsub.f32 %v221_v27, %v1379_v11 }
  0x70   : > { %v927_v41 = vpop.eup %926  ;;  %v596_v42 = vmul.f32 %v925_v37, %v1377_v10  ;;  %952 = vpow2.f32 %v474_v30  ;;  %v336_v43 = vmul.f32 %v272_v34, %v272_v34  ;;  %v337_v44 = vmul.f32 %v273_v35, %v273_v35 }
  0x71   : > { %v929_v45 = vpop.eup %928  ;;  %v597_v46 = vmul.f32 %v927_v41, %v1381_v12  ;;  %954 = vpow2.f32 %v476_v31  ;;  %v478_v47 = vmul.f32 1.442695, %v398_v38  ;;  %v480_v48 = vmul.f32 1.442695, %v399_v39  ;;  %v223_v38 = vld [vmem:[%s1364_s10 + $0x38] sm:$0xff] }
  0x72   : > { %v931_v49 = vpop.eup %930  ;;  %660 = vst [vmem:[%s1423_s26] sm:$0xff] %v596_v42  ;;  %v598_v50 = vmul.f32 %v929_v45, %v1386_v15  ;;  %v400_v51 = vmul.f32 -24.953299, %v336_v43  ;;  %v401_v52 = vmul.f32 -24.953299, %v337_v44  ;;  %v338_v53 = vmul.f32 %v274_v36, %v274_v36 }
  0x73   : > { %v933_v54 = vpop.eup %932  ;;  %661 = vst [vmem:[%s1423_s26 + $0x8] sm:$0xff] %v597_v46  ;;  %v599_v55 = vmul.f32 %v931_v49, %v1390_v17  ;;  %956 = vpow2.f32 %v478_v47  ;;  %v339_v56 = vmul.f32 %v275_v40, %v275_v40  ;;  %v276_v57 = vsub.f32 %v221_v27, %v1384_v14 }
  0x74   : > { %v935_v59 = vpop.eup %934  ;;  %662 = vst [vmem:[%s1423_s26 + $0x10] sm:$0xff] %v598_v50  ;;  %v600_v60 = vmul.f32 %v933_v54, %v1377_v10  ;;  %958 = vpow2.f32 %v480_v48  ;;  %v482_v61 = vmul.f32 1.442695, %v400_v51  ;;  %v484_v62 = vmul.f32 1.442695, %v401_v52  ;;  %v224_v52 = vld [vmem:[%s1364_s10 + $0x40] sm:$0xff] }
  0x75   : > { %v937_v63 = vpop.eup %936  ;;  %663 = vst [vmem:[%s1423_s26 + $0x18] sm:$0xff] %v599_v55  ;;  %v601_v0 = vmul.f32 %v935_v59, %v1381_v12  ;;  %v402_v1 = vmul.f32 -24.953299, %v338_v53  ;;  %v403_v2 = vmul.f32 -24.953299, %v339_v56  ;;  %v340_v3 = vmul.f32 %v276_v57, %v276_v57 }
  0x76   : > { %v939_v4 = vpop.eup %938  ;;  %664 = vst [vmem:[%s1423_s26 + $0x20] sm:$0xff] %v600_v60  ;;  %v602_v5 = vmul.f32 %v937_v63, %v1386_v15  ;;  %960 = vpow2.f32 %v482_v61  ;;  %v277_v6 = vsub.f32 %v221_v27, %v1388_v16  ;;  %v278_v7 = vsub.f32 %v222_v58, %v1375_v9 }
  0x77   : > { %v941_v8 = vpop.eup %940  ;;  %665 = vst [vmem:[%s1423_s26 + $0x28] sm:$0xff] %v601_v0  ;;  %v603_v13 = vmul.f32 %v939_v4, %v1390_v17  ;;  %962 = vpow2.f32 %v484_v62  ;;  %v486_v18 = vmul.f32 1.442695, %v402_v1  ;;  %v488_v19 = vmul.f32 1.442695, %v403_v2 }
  0x78   : > { %v943_v20 = vpop.eup %942  ;;  %666 = vst [vmem:[%s1423_s26 + $0x30] sm:$0xff] %v602_v5  ;;  %v604_v21 = vmul.f32 %v941_v8, %v1377_v10  ;;  %v404_v22 = vmul.f32 -24.953299, %v340_v3  ;;  %v341_v23 = vmul.f32 %v277_v6, %v277_v6  ;;  %v342_v24 = vmul.f32 %v278_v7, %v278_v7 }
  0x79   : > { %v945_v25 = vpop.eup %944  ;;  %667 = vst [vmem:[%s1423_s26 + $0x38] sm:$0xff] %v603_v13  ;;  %v605_v26 = vmul.f32 %v943_v20, %v1381_v12  ;;  %964 = vpow2.f32 %v486_v18  ;;  %v279_v27 = vsub.f32 %v222_v58, %v1379_v11  ;;  %v280_v28 = vsub.f32 %v222_v58, %v1384_v14 }
  0x7a   : > { %v947_v29 = vpop.eup %946  ;;  %668 = vst [vmem:[%s1423_s26 + $0x40] sm:$0xff] %v604_v21  ;;  %v606_v30 = vmul.f32 %v945_v25, %v1386_v15  ;;  %966 = vpow2.f32 %v488_v19  ;;  %v490_v31 = vmul.f32 1.442695, %v404_v22  ;;  %v405_v32 = vmul.f32 -24.953299, %v341_v23 }
  0x7b   : > { %v949_v33 = vpop.eup %948  ;;  %669 = vst [vmem:[%s1423_s26 + $0x48] sm:$0xff] %v605_v26  ;;  %v607_v34 = vmul.f32 %v947_v29, %v1390_v17  ;;  %v406_v35 = vmul.f32 -24.953299, %v342_v24  ;;  %v343_v36 = vmul.f32 %v279_v27, %v279_v27  ;;  %v344_v37 = vmul.f32 %v280_v28, %v280_v28  ;;  %v225_v29 = vld [vmem:[%s1364_s10 + $0x48] sm:$0xff] }
  0x7c   : > { %v951_v39 = vpop.eup %950  ;;  %670 = vst [vmem:[%s1423_s26 + $0x50] sm:$0xff] %v606_v30  ;;  %v608_v40 = vmul.f32 %v949_v33, %v1377_v10  ;;  %968 = vpow2.f32 %v490_v31  ;;  %v492_v41 = vmul.f32 1.442695, %v405_v32  ;;  %v281_v42 = vsub.f32 %v222_v58, %v1388_v16 }
  0x7d   : > { %v953_v43 = vpop.eup %952  ;;  %671 = vst [vmem:[%s1423_s26 + $0x58] sm:$0xff] %v607_v34  ;;  %v609_v44 = vmul.f32 %v951_v39, %v1381_v12  ;;  %v494_v45 = vmul.f32 1.442695, %v406_v35  ;;  %v407_v46 = vmul.f32 -24.953299, %v343_v36  ;;  %v282_v51 = vsub.f32 %v223_v38, %v1375_v9 }
  0x7e   : > { %v408_v47 = vmul.f32 -24.953299, %v344_v37  ;;  %v955_v48 = vpop.eup %954  ;;  %672 = vst [vmem:[%s1423_s26 + $0x60] sm:$0xff] %v608_v40  ;;  %v610_v49 = vmul.f32 %v953_v43, %v1386_v15  ;;  %970 = vpow2.f32 %v492_v41  ;;  %v345_v50 = vmul.f32 %v281_v42, %v281_v42 }
  0x7f   : > { %673 = vst [vmem:[%s1423_s26 + $0x68] sm:$0xff] %v609_v44  ;;  %v611_v53 = vmul.f32 %v955_v48, %v1390_v17  ;;  %972 = vpow2.f32 %v494_v45  ;;  %v496_v54 = vmul.f32 1.442695, %v407_v46  ;;  %v346_v58 = vmul.f32 %v282_v51, %v282_v51 }
  0x80   : > { %v498_v55 = vmul.f32 1.442695, %v408_v47  ;;  %v957_v56 = vpop.eup %956  ;;  %674 = vst [vmem:[%s1423_s26 + $0x70] sm:$0xff] %v610_v49  ;;  %v409_v57 = vmul.f32 -24.953299, %v345_v50  ;;  %v283_v59 = vsub.f32 %v223_v38, %v1379_v11  ;;  %v284_v60 = vsub.f32 %v223_v38, %v1384_v14 }
  0x81   : > { %v959_v61 = vpop.eup %958  ;;  %675 = vst [vmem:[%s1423_s26 + $0x78] sm:$0xff] %v611_v53  ;;  %v612_v62 = vmul.f32 %v957_v56, %v1377_v10  ;;  %974 = vpow2.f32 %v496_v54  ;;  %v285_v63 = vsub.f32 %v223_v38, %v1388_v16  ;;  %v286_v0 = vsub.f32 %v224_v52, %v1375_v9  ;;  %v226_v54 = vld [vmem:[%s1364_s10 + $0x50] sm:$0xff] }
  0x82   : > { %v613_v1 = vmul.f32 %v959_v61, %v1381_v12  ;;  %976 = vpow2.f32 %v498_v55  ;;  %v500_v2 = vmul.f32 1.442695, %v409_v57  ;;  %v410_v3 = vmul.f32 -24.953299, %v346_v58 }
  0x83   : > { %v961_v4 = vpop.eup %960  ;;  %676 = vst [vmem:[%s1423_s26 + $0x80] sm:$0xff] %v612_v62  ;;  %v347_v5 = vmul.f32 %v283_v59, %v283_v59  ;;  %v348_v6 = vmul.f32 %v284_v60, %v284_v60  ;;  %v349_v7 = vmul.f32 %v285_v63, %v285_v63  ;;  %v350_v8 = vmul.f32 %v286_v0, %v286_v0 }
  0x84   : > { %v963_v13 = vpop.eup %962  ;;  %677 = vst [vmem:[%s1423_s26 + $0x88] sm:$0xff] %v613_v1  ;;  %v614_v18 = vmul.f32 %v961_v4, %v1386_v15  ;;  %978 = vpow2.f32 %v500_v2  ;;  %v502_v19 = vmul.f32 1.442695, %v410_v3  ;;  %v287_v20 = vsub.f32 %v224_v52, %v1379_v11 }
  0x85   : > { %v615_v21 = vmul.f32 %v963_v13, %v1390_v17  ;;  %v411_v22 = vmul.f32 -24.953299, %v347_v5  ;;  %v412_v23 = vmul.f32 -24.953299, %v348_v6  ;;  %v413_v24 = vmul.f32 -24.953299, %v349_v7 }
  0x86   : > { %v965_v25 = vpop.eup %964  ;;  %678 = vst [vmem:[%s1423_s26 + $0x90] sm:$0xff] %v614_v18  ;;  %980 = vpow2.f32 %v502_v19  ;;  %v414_v26 = vmul.f32 -24.953299, %v350_v8  ;;  %v351_v27 = vmul.f32 %v287_v20, %v287_v20  ;;  %v288_v28 = vsub.f32 %v224_v52, %v1384_v14 }
  0x87   : > { %v967_v30 = vpop.eup %966  ;;  %679 = vst [vmem:[%s1423_s26 + $0x98] sm:$0xff] %v615_v21  ;;  %v616_v31 = vmul.f32 %v965_v25, %v1377_v10  ;;  %v504_v32 = vmul.f32 1.442695, %v411_v22  ;;  %v506_v33 = vmul.f32 1.442695, %v412_v23  ;;  %v289_v40 = vsub.f32 %v224_v52, %v1388_v16  ;;  %v227_v22 = vld [vmem:[%s1364_s10 + $0x58] sm:$0xff] }
  0x88   : > { %v508_v34 = vmul.f32 1.442695, %v413_v24  ;;  %v617_v35 = vmul.f32 %v967_v30, %v1381_v12  ;;  %v510_v36 = vmul.f32 1.442695, %v414_v26  ;;  %v415_v37 = vmul.f32 -24.953299, %v351_v27 }
  0x89   : > { %v352_v38 = vmul.f32 %v288_v28, %v288_v28  ;;  %v969_v39 = vpop.eup %968  ;;  %680 = vst [vmem:[%s1423_s26 + $0xa0] sm:$0xff] %v616_v31  ;;  %982 = vpow2.f32 %v504_v32  ;;  %v290_v41 = vsub.f32 %v225_v29, %v1375_v9  ;;  %v291_v42 = vsub.f32 %v225_v29, %v1379_v11 }
  0x8a   : > { %681 = vst [vmem:[%s1423_s26 + $0xa8] sm:$0xff] %v617_v35  ;;  %v618_v43 = vmul.f32 %v969_v39, %v1386_v15  ;;  %984 = vpow2.f32 %v506_v33  ;;  %v512_v44 = vmul.f32 1.442695, %v415_v37  ;;  %v353_v47 = vmul.f32 %v289_v40, %v289_v40 }
  0x8b   : > { %v416_v45 = vmul.f32 -24.953299, %v352_v38  ;;  %v971_v46 = vpop.eup %970  ;;  %986 = vpow2.f32 %v508_v34  ;;  %v354_v48 = vmul.f32 %v290_v41, %v290_v41  ;;  %v355_v49 = vmul.f32 %v291_v42, %v291_v42 }
  0x8c   : > { %v973_v50 = vpop.eup %972  ;;  %682 = vst [vmem:[%s1423_s26 + $0xb0] sm:$0xff] %v618_v43  ;;  %v619_v51 = vmul.f32 %v971_v46, %v1390_v17  ;;  %988 = vpow2.f32 %v510_v36  ;;  %v292_v53 = vsub.f32 %v225_v29, %v1384_v14  ;;  %v417_v56 = vmul.f32 -24.953299, %v353_v47 }
  0x8d   : > { %v514_v52 = vmul.f32 1.442695, %v416_v45  ;;  %v620_v55 = vmul.f32 %v973_v50, %v1377_v10  ;;  %990 = vpow2.f32 %v512_v44  ;;  %v418_v57 = vmul.f32 -24.953299, %v354_v48 }
  0x8e   : > { %v975_v58 = vpop.eup %974  ;;  %683 = vst [vmem:[%s1423_s26 + $0xb8] sm:$0xff] %v619_v51  ;;  %v419_v59 = vmul.f32 -24.953299, %v355_v49  ;;  %v356_v60 = vmul.f32 %v292_v53, %v292_v53  ;;  %v293_v61 = vsub.f32 %v225_v29, %v1388_v16  ;;  %v516_v0 = vmul.f32 1.442695, %v417_v56  ;;  %v228_v51 = vld [vmem:[%s1364_s10 + $0x60] sm:$0xff] }
  0x8f   : > { %992 = vpow2.f32 %v514_v52  ;;  %v977_v62 = vpop.eup %976  ;;  %684 = vst [vmem:[%s1423_s26 + $0xc0] sm:$0xff] %v620_v55  ;;  %v621_v63 = vmul.f32 %v975_v58, %v1381_v12  ;;  %v518_v1 = vmul.f32 1.442695, %v418_v57  ;;  %v294_v2 = vsub.f32 %v226_v54, %v1375_v9 }
  0x90   : > { %v622_v3 = vmul.f32 %v977_v62, %v1386_v15  ;;  %v520_v4 = vmul.f32 1.442695, %v419_v59  ;;  %v420_v5 = vmul.f32 -24.953299, %v356_v60  ;;  %v357_v6 = vmul.f32 %v293_v61, %v293_v61 }
  0x91   : > { %v979_v7 = vpop.eup %978  ;;  %685 = vst [vmem:[%s1423_s26 + $0xc8] sm:$0xff] %v621_v63  ;;  %994 = vpow2.f32 %v516_v0  ;;  %v358_v8 = vmul.f32 %v294_v2, %v294_v2  ;;  %v295_v13 = vsub.f32 %v226_v54, %v1379_v11  ;;  %v296_v18 = vsub.f32 %v226_v54, %v1384_v14 }
  0x92   : > { %686 = vst [vmem:[%s1423_s26 + $0xd0] sm:$0xff] %v622_v3  ;;  %v623_v19 = vmul.f32 %v979_v7, %v1390_v17  ;;  %996 = vpow2.f32 %v518_v1  ;;  %v522_v20 = vmul.f32 1.442695, %v420_v5  ;;  %v421_v21 = vmul.f32 -24.953299, %v357_v6 }
  0x93   : > { %v981_v23 = vpop.eup %980  ;;  %998 = vpow2.f32 %v520_v4  ;;  %v422_v24 = vmul.f32 -24.953299, %v358_v8  ;;  %v359_v25 = vmul.f32 %v295_v13, %v295_v13  ;;  %v360_v26 = vmul.f32 %v296_v18, %v296_v18 }
  0x94   : > { %687 = vst [vmem:[%s1423_s26 + $0xd8] sm:$0xff] %v623_v19  ;;  %v624_v27 = vmul.f32 %v981_v23, %v1377_v10  ;;  %1000 = vpow2.f32 %v522_v20  ;;  %v524_v28 = vmul.f32 1.442695, %v421_v21  ;;  %v297_v29 = vsub.f32 %v226_v54, %v1388_v16  ;;  %v229_v20 = vld [vmem:[%s1364_s10 + $0x68] sm:$0xff] }
  0x95   : > { %v526_v30 = vmul.f32 1.442695, %v422_v24  ;;  %v423_v31 = vmul.f32 -24.953299, %v359_v25  ;;  %v424_v32 = vmul.f32 -24.953299, %v360_v26  ;;  %v298_v33 = vsub.f32 %v227_v22, %v1375_v9 }
  0x96   : > { %v983_v34 = vpop.eup %982  ;;  %688 = vst [vmem:[%s1423_s26 + $0xe0] sm:$0xff] %v624_v27  ;;  %1002 = vpow2.f32 %v524_v28  ;;  %v361_v35 = vmul.f32 %v297_v29, %v297_v29  ;;  %v299_v36 = vsub.f32 %v227_v22, %v1379_v11  ;;  %v300_v37 = vsub.f32 %v227_v22, %v1384_v14 }
  0x97   : > { %v985_v38 = vpop.eup %984  ;;  %v625_v39 = vmul.f32 %v983_v34, %v1381_v12  ;;  %1004 = vpow2.f32 %v526_v30  ;;  %v528_v40 = vmul.f32 1.442695, %v423_v31  ;;  %v530_v41 = vmul.f32 1.442695, %v424_v32 }
  0x98   : > { %v987_v42 = vpop.eup %986  ;;  %v626_v43 = vmul.f32 %v985_v38, %v1386_v15  ;;  %v425_v44 = vmul.f32 -24.953299, %v361_v35  ;;  %v362_v45 = vmul.f32 %v298_v33, %v298_v33  ;;  %v363_v46 = vmul.f32 %v299_v36, %v299_v36 }
  0x99   : > { %v989_v47 = vpop.eup %988  ;;  %689 = vst [vmem:[%s1423_s26 + $0xe8] sm:$0xff] %v625_v39  ;;  %v627_v48 = vmul.f32 %v987_v42, %v1390_v17  ;;  %1006 = vpow2.f32 %v528_v40  ;;  %v364_v49 = vmul.f32 %v300_v37, %v300_v37  ;;  %v301_v50 = vsub.f32 %v227_v22, %v1388_v16  ;;  %v230_v42 = vld [vmem:[%s1364_s10 + $0x70] sm:$0xff] }
  0x9a   : > { %v991_v52 = vpop.eup %990  ;;  %690 = vst [vmem:[%s1423_s26 + $0xf0] sm:$0xff] %v626_v43  ;;  %v628_v53 = vmul.f32 %v989_v47, %v1377_v10  ;;  %1008 = vpow2.f32 %v530_v41  ;;  %v532_v54 = vmul.f32 1.442695, %v425_v44  ;;  %v426_v55 = vmul.f32 -24.953299, %v362_v45 }
  0x9b   : > { %691 = vst [vmem:[%s1423_s26 + $0xf8] sm:$0xff] %v627_v48  ;;  %v629_v57 = vmul.f32 %v991_v52, %v1381_v12  ;;  %v427_v58 = vmul.f32 -24.953299, %v363_v46  ;;  %v428_v59 = vmul.f32 -24.953299, %v364_v49  ;;  %v365_v60 = vmul.f32 %v301_v50, %v301_v50 }
  0x9c   : > { %v993_v56 = vpop.eup %992  ;;  %692 = vst [vmem:[%s1423_s26 + $0x100] sm:$0xff] %v628_v53  ;;  %1010 = vpow2.f32 %v532_v54  ;;  %v534_v62 = vmul.f32 1.442695, %v426_v55  ;;  %v302_v63 = vsub.f32 %v228_v51, %v1375_v9  ;;  %v303_v3 = vsub.f32 %v228_v51, %v1379_v11 }
  0x9d   : > { %v630_v61 = vmul.f32 %v993_v56, %v1386_v15  ;;  %693 = vst [vmem:[%s1423_s26 + $0x108] sm:$0xff] %v629_v57  ;;  %v536_v0 = vmul.f32 1.442695, %v427_v58  ;;  %v538_v1 = vmul.f32 1.442695, %v428_v59  ;;  %v304_v6 = vsub.f32 %v228_v51, %v1384_v14 }
  0x9e   : > { %v429_v2 = vmul.f32 -24.953299, %v365_v60  ;;  %v995_v4 = vpop.eup %994  ;;  %1012 = vpow2.f32 %v534_v62  ;;  %v366_v5 = vmul.f32 %v302_v63, %v302_v63  ;;  %v305_v7 = vsub.f32 %v228_v51, %v1388_v16 }
  0x9f   : > { %694 = vst [vmem:[%s1423_s26 + $0x110] sm:$0xff] %v630_v61  ;;  %v997_v8 = vpop.eup %996  ;;  %v631_v13 = vmul.f32 %v995_v4, %v1390_v17  ;;  %1014 = vpow2.f32 %v536_v0  ;;  %v367_v19 = vmul.f32 %v303_v3, %v303_v3  ;;  %v368_v24 = vmul.f32 %v304_v6, %v304_v6  ;;  %v231_v6 = vld [vmem:[%s1364_s10 + $0x78] sm:$0xff] }
  0xa0   : > { %v540_v18 = vmul.f32 1.442695, %v429_v2  ;;  %v999_v21 = vpop.eup %998  ;;  %v632_v22 = vmul.f32 %v997_v8, %v1377_v10  ;;  %1016 = vpow2.f32 %v538_v1  ;;  %v430_v23 = vmul.f32 -24.953299, %v366_v5 }
  0xa1   : > { %v1001_v25 = vpop.eup %1000  ;;  %695 = vst [vmem:[%s1423_s26 + $0x118] sm:$0xff] %v631_v13  ;;  %v633_v26 = vmul.f32 %v999_v21, %v1381_v12  ;;  %v431_v27 = vmul.f32 -24.953299, %v367_v19  ;;  %v369_v28 = vmul.f32 %v305_v7, %v305_v7  ;;  %v432_v31 = vmul.f32 -24.953299, %v368_v24 }
  0xa2   : > { %1018 = vpow2.f32 %v540_v18  ;;  %696 = vst [vmem:[%s1423_s26 + $0x120] sm:$0xff] %v632_v22  ;;  %v634_v29 = vmul.f32 %v1001_v25, %v1386_v15  ;;  %v542_v30 = vmul.f32 1.442695, %v430_v23  ;;  %v306_v32 = vsub.f32 %v229_v20, %v1375_v9 }
  0xa3   : > { %v1003_v33 = vpop.eup %1002  ;;  %697 = vst [vmem:[%s1423_s26 + $0x128] sm:$0xff] %v633_v26  ;;  %v544_v34 = vmul.f32 1.442695, %v431_v27  ;;  %v433_v35 = vmul.f32 -24.953299, %v369_v28  ;;  %v307_v36 = vsub.f32 %v229_v20, %v1379_v11  ;;  %v308_v37 = vsub.f32 %v229_v20, %v1384_v14 }
  0xa4   : > { %v1005_v38 = vpop.eup %1004  ;;  %698 = vst [vmem:[%s1423_s26 + $0x130] sm:$0xff] %v634_v29  ;;  %v635_v39 = vmul.f32 %v1003_v33, %v1390_v17  ;;  %1020 = vpow2.f32 %v542_v30  ;;  %v546_v40 = vmul.f32 1.442695, %v432_v31  ;;  %v370_v41 = vmul.f32 %v306_v32, %v306_v32 }
  0xa5   : > { %v636_v43 = vmul.f32 %v1005_v38, %v1377_v10  ;;  %1022 = vpow2.f32 %v544_v34  ;;  %v548_v44 = vmul.f32 1.442695, %v433_v35  ;;  %v371_v45 = vmul.f32 %v307_v36, %v307_v36 }
  0xa6   : > { %v1007_v46 = vpop.eup %1006  ;;  %699 = vst [vmem:[%s1423_s26 + $0x138] sm:$0xff] %v635_v39  ;;  %1024 = vpow2.f32 %v546_v40  ;;  %v434_v47 = vmul.f32 -24.953299, %v370_v41  ;;  %v372_v48 = vmul.f32 %v308_v37, %v308_v37  ;;  %v309_v49 = vsub.f32 %v229_v20, %v1388_v16 }
  0xa7   : > { %v1009_v50 = vpop.eup %1008  ;;  %700 = vst [vmem:[%s1423_s26 + $0x140] sm:$0xff] %v636_v43  ;;  %v637_v51 = vmul.f32 %v1007_v46, %v1381_v12  ;;  %1026 = vpow2.f32 %v548_v44  ;;  %v435_v52 = vmul.f32 -24.953299, %v371_v45  ;;  %v310_v53 = vsub.f32 %v230_v42, %v1375_v9 }
  0xa8   : > { %v638_v54 = vmul.f32 %v1009_v50, %v1386_v15  ;;  %v550_v55 = vmul.f32 1.442695, %v434_v47  ;;  %v436_v56 = vmul.f32 -24.953299, %v372_v48  ;;  %v373_v57 = vmul.f32 %v309_v49, %v309_v49 }
  0xa9   : > { %v1011_v58 = vpop.eup %1010  ;;  %701 = vst [vmem:[%s1423_s26 + $0x148] sm:$0xff] %v637_v51  ;;  %v552_v59 = vmul.f32 1.442695, %v435_v52  ;;  %v374_v60 = vmul.f32 %v310_v53, %v310_v53  ;;  %v311_v61 = vsub.f32 %v230_v42, %v1379_v11  ;;  %v312_v62 = vsub.f32 %v230_v42, %v1384_v14 }
  0xaa   : > { %702 = vst [vmem:[%s1423_s26 + $0x150] sm:$0xff] %v638_v54  ;;  %v639_v63 = vmul.f32 %v1011_v58, %v1390_v17  ;;  %1028 = vpow2.f32 %v550_v55  ;;  %v554_v0 = vmul.f32 1.442695, %v436_v56  ;;  %v437_v1 = vmul.f32 -24.953299, %v373_v57 }
  0xab   : > { %v1013_v2 = vpop.eup %1012  ;;  %1030 = vpow2.f32 %v552_v59  ;;  %v438_v3 = vmul.f32 -24.953299, %v374_v60  ;;  %v375_v4 = vmul.f32 %v311_v61, %v311_v61  ;;  %v376_v5 = vmul.f32 %v312_v62, %v312_v62 }
  0xac   : > { %v1015_v7 = vpop.eup %1014  ;;  %703 = vst [vmem:[%s1423_s26 + $0x158] sm:$0xff] %v639_v63  ;;  %v640_v8 = vmul.f32 %v1013_v2, %v1377_v10  ;;  %1032 = vpow2.f32 %v554_v0  ;;  %v556_v13 = vmul.f32 1.442695, %v437_v1  ;;  %v313_v18 = vsub.f32 %v230_v42, %v1388_v16 }
  0xad   : > { %v1017_v19 = vpop.eup %1016  ;;  %v641_v20 = vmul.f32 %v1015_v7, %v1381_v12  ;;  %v558_v21 = vmul.f32 1.442695, %v438_v3  ;;  %v439_v22 = vmul.f32 -24.953299, %v375_v4  ;;  %v440_v23 = vmul.f32 -24.953299, %v376_v5 }
  0xae   : > { %704 = vst [vmem:[%s1423_s26 + $0x160] sm:$0xff] %v640_v8  ;;  %v642_v25 = vmul.f32 %v1017_v19, %v1386_v15  ;;  %1034 = vpow2.f32 %v556_v13  ;;  %v377_v26 = vmul.f32 %v313_v18, %v313_v18  ;;  %v314_v27 = vsub.f32 %v231_v6, %v1375_v9 }
  0xaf   : > { %v1019_v24 = vpop.eup %1018  ;;  %705 = vst [vmem:[%s1423_s26 + $0x168] sm:$0xff] %v641_v20  ;;  %1036 = vpow2.f32 %v558_v21  ;;  %v560_v29 = vmul.f32 1.442695, %v439_v22  ;;  %v562_v30 = vmul.f32 1.442695, %v440_v23  ;;  %v315_v33 = vsub.f32 %v231_v6, %v1379_v11 }
  0xb0   : > { %v643_v28 = vmul.f32 %v1019_v24, %v1390_v17  ;;  %706 = vst [vmem:[%s1423_s26 + $0x170] sm:$0xff] %v642_v25  ;;  %v441_v31 = vmul.f32 -24.953299, %v377_v26  ;;  %v378_v32 = vmul.f32 %v314_v27, %v314_v27  ;;  %v316_v34 = vsub.f32 %v231_v6, %v1384_v14 }
  0xb1   : > { %v1021_v35 = vpop.eup %1020  ;;  %1038 = vpow2.f32 %v560_v29  ;;  %v317_v36 = vsub.f32 %v231_v6, %v1388_v16  ;;  %v379_v11 = vmul.f32 %v315_v33, %v315_v33 }
  0xb2   : > { %707 = vst [vmem:[%s1423_s26 + $0x178] sm:$0xff] %v643_v28  ;;  %v1023_v9 = vpop.eup %1022  ;;  %v644_v37 = vmul.f32 %v1021_v35, %v1377_v10  ;;  %1040 = vpow2.f32 %v562_v30  ;;  %v564_v38 = vmul.f32 1.442695, %v441_v31  ;;  %v442_v39 = vmul.f32 -24.953299, %v378_v32 }
  0xb3   : > { %v1025_v40 = vpop.eup %1024  ;;  %v645_v41 = vmul.f32 %v1023_v9, %v1381_v12  ;;  %v380_v14 = vmul.f32 %v316_v34, %v316_v34  ;;  %v381_v42 = vmul.f32 %v317_v36, %v317_v36  ;;  %v443_v46 = vmul.f32 -24.953299, %v379_v11 }
  0xb4   : > { %v1027_v43 = vpop.eup %1026  ;;  %708 = vst [vmem:[%s1423_s26 + $0x180] sm:$0xff] %v644_v37  ;;  %v646_v44 = vmul.f32 %v1025_v40, %v1386_v15  ;;  %1042 = vpow2.f32 %v564_v38  ;;  %v566_v16 = vmul.f32 1.442695, %v442_v39 }
  0xb5   : > { %709 = vst [vmem:[%s1423_s26 + $0x188] sm:$0xff] %v645_v41  ;;  %v647_v45 = vmul.f32 %v1027_v43, %v1390_v17  ;;  %v444_v47 = vmul.f32 -24.953299, %v380_v14  ;;  %v445_v48 = vmul.f32 -24.953299, %v381_v42 }
  0xb6   : > { %710 = vst [vmem:[%s1423_s26 + $0x190] sm:$0xff] %v646_v44  ;;  %1044 = vpow2.f32 %v566_v16  ;;  %v568_v50 = vmul.f32 1.442695, %v443_v46 }
  0xb7   : > { %v1029_v49 = vpop.eup %1028  ;;  %711 = vst [vmem:[%s1423_s26 + $0x198] sm:$0xff] %v647_v45  ;;  %v570_v51 = vmul.f32 1.442695, %v444_v47  ;;  %v572_v52 = vmul.f32 1.442695, %v445_v48 }
  0xb8   : > { %v1031_v53 = vpop.eup %1030  ;;  %v648_v54 = vmul.f32 %v1029_v49, %v1377_v10  ;;  %1046 = vpow2.f32 %v568_v50 }
  0xb9   : > { %v1033_v55 = vpop.eup %1032  ;;  %v649_v56 = vmul.f32 %v1031_v53, %v1381_v12  ;;  %1048 = vpow2.f32 %v570_v51 }
  0xba   : > { %712 = vst [vmem:[%s1423_s26 + $0x1a0] sm:$0xff] %v648_v54  ;;  %v650_v57 = vmul.f32 %v1033_v55, %v1386_v15  ;;  %1050 = vpow2.f32 %v572_v52 }
  0xbb   : > { %v1035_v58 = vpop.eup %1034  ;;  %713 = vst [vmem:[%s1423_s26 + $0x1a8] sm:$0xff] %v649_v56 }
  0xbc   : > { %v1037_v59 = vpop.eup %1036  ;;  %714 = vst [vmem:[%s1423_s26 + $0x1b0] sm:$0xff] %v650_v57  ;;  %v651_v60 = vmul.f32 %v1035_v58, %v1390_v17 }
  0xbd   : > { %v652_v61 = vmul.f32 %v1037_v59, %v1377_v10 }
  0xbe   : > { %v1039_v62 = vpop.eup %1038  ;;  %715 = vst [vmem:[%s1423_s26 + $0x1b8] sm:$0xff] %v651_v60 }
  0xbf   : > { %v1041_v63 = vpop.eup %1040  ;;  %716 = vst [vmem:[%s1423_s26 + $0x1c0] sm:$0xff] %v652_v61  ;;  %v653_v0 = vmul.f32 %v1039_v62, %v1381_v12 }
  0xc0   : > { %v654_v1 = vmul.f32 %v1041_v63, %v1386_v15 }
  0xc1   : > { %v1043_v2 = vpop.eup %1042  ;;  %717 = vst [vmem:[%s1423_s26 + $0x1c8] sm:$0xff] %v653_v0 }
  0xc2   : > { %718 = vst [vmem:[%s1423_s26 + $0x1d0] sm:$0xff] %v654_v1  ;;  %v655_v3 = vmul.f32 %v1043_v2, %v1390_v17 }
  0xc3   : > { %v1045_v4 = vpop.eup %1044 }
  0xc4   : > { %719 = vst [vmem:[%s1423_s26 + $0x1d8] sm:$0xff] %v655_v3  ;;  %v656_v5 = vmul.f32 %v1045_v4, %v1377_v10 }
  0xc5   : > { %v1047_v6 = vpop.eup %1046 }
  0xc6   : > { %720 = vst [vmem:[%s1423_s26 + $0x1e0] sm:$0xff] %v656_v5  ;;  %v1049_v7 = vpop.eup %1048  ;;  %v657_v8 = vmul.f32 %v1047_v6, %v1381_v12 }
  0xc7   : > { %v1051_v13 = vpop.eup %1050  ;;  %v658_v18 = vmul.f32 %v1049_v7, %v1386_v15 }
  0xc8   : > { %721 = vst [vmem:[%s1423_s26 + $0x1e8] sm:$0xff] %v657_v8  ;;  %v659_v10 = vmul.f32 %v1051_v13, %v1390_v17 }
  0xc9   : > { %722 = vst [vmem:[%s1423_s26 + $0x1f0] sm:$0xff] %v658_v18 }
  0xca   : > { %723 = vst [vmem:[%s1423_s26 + $0x1f8] sm:$0xff] %v659_v10 }
  0xcb   : > { %1145 = shalt.err (!%p1142_p12)
}
  0xcc   : > { %s1146_s22 = scalar_lea.hbm %s1604_s11, 8192  ;;  %s1150_s5 = scalar_lea.hbm %s1655_s3, 24576 }
  0xcd   : > { %p1147_p6 = scmp.ne.s32.totalorder %s1604_s11, %s1146_s22  ;;  %p1151_p13 = scmp.lt.s32.totalorder %s1604_s11, %s1655_s3 }
  0xce   : > { %p1152_p3 = scmp.lt.s32.totalorder %s1150_s5, %s1146_s22 }
  0xcf   : > { %p1148_p0 = pnand %p1147_p6, %p1671_p1 }
  0xd0   : > { %p1153_p7 = por %p1152_p3, %p1151_p13 }
  0xd1   : > { %p1149_p11 = pneg %p1148_p0 }
  0xd3   : > { %p1154_p10 = pnand %p1153_p7, %p1149_p11 }
  0xd5   : > { %1157 = shalt.err (!%p1154_p10)
}
  0xd6   : > { %s1208_s23 = smov 512   ;;  %s1209_s26 = smov 32  }
  0xd7   : > { %863 = dma.vmem_to_hbm [thread:$0]  (%p1671_p1), %s1606_s28, 8192, %s1604_s11, %s725_s16, %s1208_s23, %s1208_s23, %s1209_s26  }
  0xd8 PF: > { %p885_p5 = scmp.ge.s32.totalorder %s1200_s15, 2  ;;  %s754_s30 = sand.u32 1, %s1188_s12  }
  0xd9   : > { %p1672_p2 = scmp.ne.s32.totalorder %s1663_s25, 0  ;;  %s755_s6 = scalar_lea.sflag [#allocation4], %s754_s30 }
  0xdb   : > { %p877_p8 = pnand %p885_p5, %p1672_p2 }
  0xdd   : > { %p878_p9 = pneg %p877_p8 }
  0xdf   : > { %1183 = dma.done.wait (%p878_p9), %s755_s6, 8192  }
  0xe0   : > { %1185 = vsyncadd (%p878_p9), %s755_s6, 4294959104  ;;  %p17_p4 = scmp.ge.s32.totalorder %s1255_s18, 5   ;;  %s1673_s12 = smov %s1192_s13 }
  0xe1   : > { %s1674_s13 = smov %s1196_s14  ;;  %s1675_s14 = smov %s1267_s21 }
  0xe2   : > { %s1676_s15 = smov %s1255_s18  ;;  %19 = sbr.rel (!%p17_p4) target bundleno = 6 (0x6), region = 85 }
  0xe7   :  { %760 = vsyncpa [#allocation3], 1 }
  0xe8   :  { %762 = vsyncpa [#allocation3 + $0x1], 1 }
  0xe9   :  { %763 = vsyncpa [#allocation6], 1 }
  0xea   :  { %764 = vsyncpa [#allocation4], 1 }
  0xeb   :  { %766 = vsyncpa [#allocation4 + $0x1], 1 }

</bundles_post_ra>
